<compile_context>
chip_gen: v7x
topology: tpu7x:2x2x1
jax: 0.10.0
libtpu: 0.0.40
codegen_flags: <defaults>
</compile_context>

<pallas_src>
import functools

import jax
import jax.numpy as jnp
from jax import lax
from jax.experimental import pallas as pl
from jax.experimental.pallas import tpu as pltpu


def _round_up(x, m):
    return ((x + m - 1) // m) * m


def _mlp_kernel(*refs, n_hidden, hidden_size):
    """refs = (x, w_in, b_in, [w_h, b_h stacked], w_out, b_out, out).

    x:     (1, TB)        batch on the 128-lane axis
    w_in:  (H, 1)         b_in: (H, 1)
    w_h:   (D, H, H)      b_h:  (D, H, 1)     (only present if n_hidden > 0)
    w_out: (H, 1)         b_out: (1, 1)
    out:   (1, TB)
    """
    if n_hidden > 0:
        (x_ref, w_in_ref, b_in_ref, w_h_ref, b_h_ref,
         w_out_ref, b_out_ref, o_ref) = refs
    else:
        (x_ref, w_in_ref, b_in_ref, w_out_ref, b_out_ref, o_ref) = refs
        w_h_ref = b_h_ref = None

    x = x_ref[...]                                           # (1, TB)

    # ---- Layer 0: Linear(1, H) + ReLU.  Contraction dim is 1 -> pure VPU
    # outer product (broadcast multiply-add), no MXU pass.
    h = jnp.maximum(w_in_ref[...] * x + b_in_ref[...], 0.0)  # (H, TB)

    # ---- Hidden layers: Linear(H, H) + ReLU (statically unrolled; depth is
    # a compile-time constant and small, so static ref indices are safest).
    if n_hidden > 0:
        use_mxu = hidden_size >= 128  # only feed the MXU full-ish tiles
        for d in range(n_hidden):
            w = w_h_ref[d]                                   # (H, H)
            b = b_h_ref[d]                                   # (H, 1)
            if use_mxu:
                z = jnp.dot(w, h, preferred_element_type=jnp.float32)
            else:
                # VPU broadcast-FMA: z[i, n] = sum_k w[i, k] * h[k, n]
                z = w[:, 0:1] * h[0:1, :]
                for k in range(1, hidden_size):
                    z = z + w[:, k:k + 1] * h[k:k + 1, :]
            h = jnp.maximum(z + b, 0.0)

    # ---- Output layer: Linear(H, 1).  Output dim is 1 -> VPU multiply +
    # sublane reduce (XLU), no MXU pass.
    out = jnp.sum(w_out_ref[...] * h, axis=0, keepdims=True) + b_out_ref[...]
    o_ref[...] = out.astype(o_ref.dtype)                      # (1, TB)


def physics_model_forward(x, params, model_depth, *, max_tile=512):
    """Forward pass of PhysicsModel as a single Pallas kernel.

    x: (N, 1) float32.  Returns (N, 1) float32.
    """
    n = x.shape[0]
    h_size = params["w_in"].shape[0]

    # Lane-dense batch tile (multiple of 128), batch grid for pipelining.
    tb = min(max_tile, _round_up(max(n, 1), 128))
    n_pad = _round_up(n, tb)
    x_row = jnp.pad(x.astype(jnp.float32).reshape(1, n),
                    ((0, 0), (0, n_pad - n)))                 # (1, N_pad)

    inputs = [x_row, params["w_in"], params["b_in"]]
    in_specs = [
        pl.BlockSpec((1, tb), lambda i: (0, i)),              # x: tiled over batch
        pl.BlockSpec(params["w_in"].shape, lambda i: (0, 0)),  # weights: resident
        pl.BlockSpec(params["b_in"].shape, lambda i: (0, 0)),
    ]
    if model_depth > 0:
        inputs += [params["w_h"], params["b_h"]]
        in_specs += [
            pl.BlockSpec(params["w_h"].shape, lambda i: (0, 0, 0)),
            pl.BlockSpec(params["b_h"].shape, lambda i: (0, 0, 0)),
        ]
    inputs += [params["w_out"], params["b_out"]]
    in_specs += [
        pl.BlockSpec(params["w_out"].shape, lambda i: (0, 0)),
        pl.BlockSpec(params["b_out"].shape, lambda i: (0, 0)),
    ]

    kernel = functools.partial(_mlp_kernel, n_hidden=model_depth,
                               hidden_size=h_size)

    out_row = pl.pallas_call(
        kernel,
        out_shape=jax.ShapeDtypeStruct((1, n_pad), jnp.float32),
        grid=(n_pad // tb,),
        in_specs=in_specs,
        out_specs=pl.BlockSpec((1, tb), lambda i: (0, i)),    # lane-dense output
        compiler_params=pltpu.CompilerParams(
            dimension_semantics=("parallel",),                # shard batch on v7x
            vmem_limit_bytes=32 * 1024 * 1024,                # safe on 64 MiB v7x
        ),
    )(*inputs)

    return out_row[0, :n].reshape(n, 1)


def init_params(key, model_size, model_depth):
    """PyTorch-style Linear init (U(-1/sqrt(fan_in), +1/sqrt(fan_in))).

    Layout is kernel-friendly / transposed:
      w_in (H,1), b_in (H,1), w_h (D,H,H), b_h (D,H,1), w_out (H,1), b_out (1,1).
    """
    def linear(k, fan_in, fan_out):
        kw, kb = jax.random.split(k)
        bound = 1.0 / (fan_in ** 0.5)
        w = jax.random.uniform(kw, (fan_out, fan_in), jnp.float32, -bound, bound)
        b = jax.random.uniform(kb, (fan_out, 1), jnp.float32, -bound, bound)
        return w, b

    keys = jax.random.split(key, model_depth + 2)
    w_in, b_in = linear(keys[0], 1, model_size)
    params = {"w_in": w_in, "b_in": b_in, "w_h": None, "b_h": None}
    if model_depth > 0:
        ws, bs = zip(*(linear(keys[1 + d], model_size, model_size)
                       for d in range(model_depth)))
        params["w_h"] = jnp.stack(ws)     # (D, H, H)
        params["b_h"] = jnp.stack(bs)     # (D, H, 1)
    w_out, b_out = linear(keys[-1], model_size, 1)   # (1, H), (1, 1)
    params["w_out"] = w_out.T                         # (H, 1)
    params["b_out"] = b_out                           # (1, 1)
    return params


def reference_forward(x, params, model_depth):
    """Pure-JAX reference (transposed formulation, f32-exact)."""
    h = jnp.maximum(params["w_in"] * x.T + params["b_in"], 0.0)     # (H, N)
    for d in range(model_depth):
        z = jnp.einsum("ij,jn->in", params["w_h"][d], h,
                       precision=lax.Precision.HIGHEST)
        h = jnp.maximum(z + params["b_h"][d], 0.0)
    out = jnp.sum(params["w_out"] * h, axis=0, keepdims=True) + params["b_out"]
    return out.T                                                    # (N, 1)


if __name__ == "__main__":
    # TODO(synk): only the forward pass is implemented; the SGD training loop,
    # MSE loss, and the test/graph host utilities of PhysicsModel are
    # host-side and not part of the kernel.
    key = jax.random.PRNGKey(0)

    configs = [
        # PhysicsModel defaults: model_size=10, model_depth=0, single tile.
        dict(model_size=10, model_depth=0, batch=8, max_tile=512),
        # Deeper net + batch big enough to exercise a multi-tile batch grid
        # (tb=128 -> 3 grid steps) while staying small.
        dict(model_size=10, model_depth=2, batch=260, max_tile=128),
    ]

    for cfg in configs:
        key, kp, kx = jax.random.split(key, 3)
        params = init_params(kp, cfg["model_size"], cfg["model_depth"])
        x = jax.random.normal(kx, (cfg["batch"], 1), jnp.float32)

        out = physics_model_forward(x, params, cfg["model_depth"],
                                    max_tile=cfg["max_tile"])
        out = jax.block_until_ready(out)

        ref = reference_forward(x, params, cfg["model_depth"])
        assert out.shape == (cfg["batch"], 1)
        assert jnp.allclose(out, ref, atol=1e-5, rtol=1e-5), (
            f"mismatch for config {cfg}: "
            f"max abs err {float(jnp.max(jnp.abs(out - ref)))}")

    print("KERNEL_OK")
</pallas_src>

<mosaic_0001>
module attributes {stable_mosaic.version = 11 : i64} {
  func.func @_mlp_kernel(%arg0: i32, %arg1: memref<1x128xf32, #tpu.memory_space<vmem>>, %arg2: memref<10x1xf32, #tpu.memory_space<vmem>>, %arg3: memref<10x1xf32, #tpu.memory_space<vmem>>, %arg4: memref<10x1xf32, #tpu.memory_space<vmem>>, %arg5: memref<1x1xf32, #tpu.memory_space<vmem>>, %arg6: memref<1x128xf32, #tpu.memory_space<vmem>>) attributes {dimension_semantics = [#tpu.dimension_semantics<parallel>], iteration_bounds = array<i64: 1>, scalar_prefetch = 0 : i64, scratch_operands = 0 : i64, tpu.core_type = #tpu.core_type<tc>, window_params = [{transform_indices = @transform_0, window_bounds = array<i64: 1, 128>}, {pipeline_mode = #tpu.pipeline_mode<synchronous>, transform_indices = @transform_1, window_bounds = array<i64: 10, 1>}, {pipeline_mode = #tpu.pipeline_mode<synchronous>, transform_indices = @transform_2, window_bounds = array<i64: 10, 1>}, {pipeline_mode = #tpu.pipeline_mode<synchronous>, transform_indices = @transform_3, window_bounds = array<i64: 10, 1>}, {pipeline_mode = #tpu.pipeline_mode<synchronous>, transform_indices = @transform_4, window_bounds = array<i64: 1, 1>}, {transform_indices = @transform_5, window_bounds = array<i64: 1, 128>}]} {
    %c0 = arith.constant 0 : index
    %c0_0 = arith.constant 0 : index
    %0 = vector.load %arg1[%c0, %c0_0] : memref<1x128xf32, #tpu.memory_space<vmem>>, vector<1x128xf32>
    %c0_1 = arith.constant 0 : index
    %c0_2 = arith.constant 0 : index
    %1 = vector.load %arg2[%c0_1, %c0_2] : memref<10x1xf32, #tpu.memory_space<vmem>>, vector<10x1xf32>
    %2 = vector.broadcast %1 : vector<10x1xf32> to vector<10x128xf32>
    %3 = vector.broadcast %0 : vector<1x128xf32> to vector<10x128xf32>
    %4 = arith.mulf %2, %3 : vector<10x128xf32>
    %c0_3 = arith.constant 0 : index
    %c0_4 = arith.constant 0 : index
    %5 = vector.load %arg3[%c0_3, %c0_4] : memref<10x1xf32, #tpu.memory_space<vmem>>, vector<10x1xf32>
    %6 = vector.broadcast %5 : vector<10x1xf32> to vector<10x128xf32>
    %7 = arith.addf %4, %6 : vector<10x128xf32>
    %cst = arith.constant 0.000000e+00 : f32
    %8 = vector.broadcast %cst : f32 to vector<10x128xf32>
    %9 = arith.maximumf %7, %8 : vector<10x128xf32>
    %c0_5 = arith.constant 0 : index
    %c0_6 = arith.constant 0 : index
    %10 = vector.load %arg4[%c0_5, %c0_6] : memref<10x1xf32, #tpu.memory_space<vmem>>, vector<10x1xf32>
    %11 = vector.broadcast %10 : vector<10x1xf32> to vector<10x128xf32>
    %12 = arith.mulf %11, %9 : vector<10x128xf32>
    %cst_7 = arith.constant dense<0.000000e+00> : vector<128xf32>
    %13 = vector.multi_reduction <add>, %12, %cst_7 [0] : vector<10x128xf32> to vector<128xf32>
    %14 = vector.shape_cast %13 : vector<128xf32> to vector<1x128xf32>
    %c0_8 = arith.constant 0 : index
    %c0_9 = arith.constant 0 : index
    %15 = vector.load %arg5[%c0_8, %c0_9] : memref<1x1xf32, #tpu.memory_space<vmem>>, vector<1x1xf32>
    %16 = vector.broadcast %15 : vector<1x1xf32> to vector<1x128xf32>
    %17 = arith.addf %14, %16 : vector<1x128xf32>
    %c0_10 = arith.constant 0 : index
    %c0_11 = arith.constant 0 : index
    %18 = vector.load %arg6[%c0_10, %c0_11] : memref<1x128xf32, #tpu.memory_space<vmem>>, vector<1x128xf32>
    tpu.vector_store %arg6[%c0_10, %c0_11], %17 {strides = array<i32>} : memref<1x128xf32, #tpu.memory_space<vmem>>, vector<1x128xf32>,
    return
  }
  func.func @transform_0(%arg0: i32) -> (i32, i32) {
    %c0_i32 = arith.constant 0 : i32
    %c0_i32_0 = arith.constant 0 : i32
    return %c0_i32, %arg0 : i32, i32
  }
  func.func @transform_1(%arg0: i32) -> (i32, i32) {
    %c0_i32 = arith.constant 0 : i32
    %c0_i32_0 = arith.constant 0 : i32
    %c0_i32_1 = arith.constant 0 : i32
    return %c0_i32, %c0_i32_0 : i32, i32
  }
  func.func @transform_2(%arg0: i32) -> (i32, i32) {
    %c0_i32 = arith.constant 0 : i32
    %c0_i32_0 = arith.constant 0 : i32
    %c0_i32_1 = arith.constant 0 : i32
    return %c0_i32, %c0_i32_0 : i32, i32
  }
  func.func @transform_3(%arg0: i32) -> (i32, i32) {
    %c0_i32 = arith.constant 0 : i32
    %c0_i32_0 = arith.constant 0 : i32
    %c0_i32_1 = arith.constant 0 : i32
    return %c0_i32, %c0_i32_0 : i32, i32
  }
  func.func @transform_4(%arg0: i32) -> (i32, i32) {
    %c0_i32 = arith.constant 0 : i32
    %c0_i32_0 = arith.constant 0 : i32
    %c0_i32_1 = arith.constant 0 : i32
    return %c0_i32, %c0_i32_0 : i32, i32
  }
  func.func @transform_5(%arg0: i32) -> (i32, i32) {
    %c0_i32 = arith.constant 0 : i32
    %c0_i32_0 = arith.constant 0 : i32
    return %c0_i32, %arg0 : i32, i32
  }
}

</mosaic_0001>

<bundles_post_ra>
// kernel: tpu_custom_call.1
= control target key start
LH: loop header
LB: loop body
LE: loop exit
PB: predicated region body
PF: predicated region fallthrough
CT: control target
= control target key end

     0   :  { %s206_s0 = inlined_call_operand.vmem [shape: f32[1,128], index: 0, kind: input, shape index: {}]   ;;  %s207_s1 = inlined_call_operand.vmem [shape: f32[10,1], index: 1, kind: input, shape index: {}]   ;;  %s208_s2 = inlined_call_operand.vmem [shape: f32[10,1], index: 2, kind: input, shape index: {}]   ;;  %s209_s3 = inlined_call_operand.vmem [shape: f32[10,1], index: 3, kind: input, shape index: {}]   ;;  %s210_s4 = inlined_call_operand.<no memory space> [shape: f32[1,1], index: 4, kind: input, shape index: {}]   ;;  %s211_s5 = inlined_call_operand.hbm [shape: f32[1,128], index: 5, kind: output, shape index: {}]  }
   0x1   :  { %v10_v0 = vstv %s210_s4 }
   0x2   :  { %11 = vst [vmem:[#allocation2] sm:$0x1] %v10_v0 }
   0x3   :  { %v45_v1 = vld [vmem:[%s208_s2 + $0x8] sm:$0x3]  ;;  %v138_v3 = vmov 0  }
   0x4   :  { %v25_v2 = vld [vmem:[%s207_s1 + $0x8] sm:$0x3]  ;;  %113 = vset.pattern.permute.xlu1 %v138_v3  ;;  %112 = vset.pattern.permute.xlu0 %v138_v3 }
   0x5   :  { %53 = vperm.xlu1 %113, %v45_v1   ;;  %33 = vperm.xlu0 %112, %v25_v2  }
   0x6   :  { %12 = vsyncpa [#allocation4], 0  ;;  %v44_v4 = vld [vmem:[%s208_s2] sm:$0xff]  ;;  %v61_v7 = vld [vmem:[%s209_s3 + $0x8] sm:$0x3]  ;;  %vm74_vm0 = vcmask 1041408   ;;  %v89_v26 = vlaneseq }
   0x7   :  { %v24_v5 = vld [vmem:[%s207_s1] sm:$0xff] }
   0x8   :  { %v60_v6 = vld [vmem:[%s209_s3] sm:$0xff]  ;;  %v90_v29 = vshrl.u32 %v89_v26, 7 }
   0x9   :  { %48 = vperm.xlu1 %113, %v44_v4   ;;  %28 = vperm.xlu0 %112, %v24_v5   ;;  %v83_v8 = vld [vmem:[#allocation2] sm:$0x1] }
   0xa   :  { %v109_v9 = vld [vmem:[%s206_s0] ss:$0 sm:$0xff]  ;;  %v91_v31 = vsub.s32 0, %v90_v29  ;;  %s139_s0 = smov [#allocation3]  }
   0xb   :  { %s101_s1 = sshll.u32 %s139_s0, 4  ;;  %s102_s1 = int_to_ptr.vmem [resolvable:$true] %s101_s1 }
   0xc   :  { %s114_s3 = scalar_lea.vmem %s102_s1, 16  ;;  %s118_s7 = scalar_lea.vmem %s102_s1, 32 }
   0xd   :  { %64 = vperm.xlu1 %113, %v60_v6   ;;  %69 = vperm.xlu0 %112, %v61_v7   ;;  %p115_p0 = scmp.ne.s32.totalorder %s102_s1, %s114_s3  ;;  %p119_p1 = scmp.lt.s32.totalorder %s102_s1, %s102_s1 }
   0xe   :  { %p120_p2 = scmp.lt.s32.totalorder %s118_s7, %s114_s3 }
  0x10   :  { %p121_p3 = por %p120_p2, %p119_p1 }
  0x11   :  { %86 = vperm.xlu0 %112, %v83_v8  }
  0x12   :  { %p122_p4 = pnand %p121_p3, %p115_p0 }
  0x84   :  { %v54_v10 = vpop.permute.xlu1 %53  ;;  %v34_v11 = vpop.permute.xlu0 %33 }
  0x85   :  { %v43_v12 = vmul.f32 %v109_v9, %v34_v11 }
  0x87   :  { %v57_v13 = vadd.f32 %v54_v10, %v43_v12 }
  0x88   :  { %v49_v14 = vpop.permute.xlu1 %48  ;;  %v29_v15 = vpop.permute.xlu0 %28 }
  0x89   :  { %v42_v16 = vmul.f32 %v109_v9, %v29_v15  ;;  %v59_v18 = vmax.f32 %v57_v13, 0.0 }
  0x8b   :  { %v56_v17 = vadd.f32 %v49_v14, %v42_v16 }
  0x8c   :  { %v70_v19 = vpop.permute.xlu0 %69  ;;  %v65_v22 = vpop.permute.xlu1 %64 }
  0x8d   :  { %v58_v20 = vmax.f32 %v56_v17, 0.0  ;;  %v73_v21 = vmul.f32 %v70_v19, %v59_v18 }
  0x8f   :  { %v72_v23 = vmul.f32 %v65_v22, %v58_v20  ;;  %v75_v24 = vsel %vm74_vm0, %v73_v21, 0.0 }
  0x90   :  { %v87_v33 = vpop.permute.xlu0 %86 }
  0x91   :  { %v76_v25 = vadd.f32 %v75_v24, %v72_v23  ;;  %v92_v35 = vrot.slane %v87_v33, %v91_v31 }
  0x93   :  { %v77_v27 = vrot.slane %v76_v25, 4 }
  0x95   :  { %v78_v28 = vadd.f32 %v77_v27, %v76_v25 }
  0x97   :  { %v79_v30 = vrot.slane %v78_v28, 2 }
  0x99   :  { %v80_v32 = vadd.f32 %v79_v30, %v78_v28 }
  0x9b   :  { %v81_v34 = vrot.slane %v80_v32, 1 }
  0x9d   :  { %v82_v36 = vadd.f32 %v81_v34, %v80_v32 }
  0x9f   :  { %v93_v37 = vadd.f32 %v92_v35, %v82_v36 }
  0xa1   :  { %94 = vst [vmem:[#allocation3] sm:$0x1] %v93_v37 }
  0xa2   :  { %125 = shalt.err (!%p122_p4)
}
  0xa3   :  { %s126_s10 = scalar_lea.hbm %s211_s5, 16 }
  0xa4   :  { %p127_p5 = scmp.ne.s32.totalorder %s211_s5, %s126_s10  ;;  %p130_p6 = scmp.lt.u32.totalorder %s126_s10, %s211_s5 }
  0xa6   :  { %p132_p7 = pnand %p130_p6, %p127_p5 }
  0xa8   :  { %135 = shalt.err (!%p132_p7)
}
  0xa9   :  { %104 = dma.vmem_to_hbm [thread:$0]  %s102_s1, 16, %s211_s5, [#allocation4]  }
  0xaa   :  { %136 = dma.done.wait [#allocation4], 16  }
  0xab   :  { %137 = vsyncadd [#allocation4], 4294967280 }
  0xac   :  { %108 = vsyncpa [#allocation4], 1 }

</bundles_post_ra>
